<compile_context>
chip_gen: v5e
topology: v5e:2x2
jax: 0.10.0
libtpu: 0.0.40
codegen_flags: <defaults>
</compile_context>

<pallas_src>
import jax
import jax.numpy as jnp
from jax.experimental import pallas as pl
from jax.experimental.pallas import tpu as pltpu


def bahdanau_kernel(q_ref, k_ref, waT_ref, ba_ref, uaT_ref, bu_ref,
                    va_ref, bv_ref, ctx_ref, w_ref):
    # q_ref:   (BB, 1, H) bf16   queries for this batch block
    # k_ref:   (BB, S, H) bf16   keys for this batch block
    # waT_ref: (H, H)     bf16   Wa.weight.T
    # ba_ref:  (1, H)     f32    Wa.bias
    # uaT_ref: (H, H)     bf16   Ua.weight.T
    # bu_ref:  (1, H)     f32    Ua.bias
    # va_ref:  (1, H)     f32    Va.weight (row vector)
    # bv_ref:  (1, 1)     f32    Va.bias
    # ctx_ref: (BB, 1, H) f32    output context
    # w_ref:   (BB, 1, S) f32    output attention weights (lane-dense over S)
    BB, S, H = k_ref.shape
    keys = k_ref[...]                       # (BB, S, H) bf16
    q = q_ref[...].reshape(BB, H)           # (BB, H)    bf16

    # Linear layers on the MXU, f32 accumulation.
    wq = jnp.dot(q, waT_ref[...], preferred_element_type=jnp.float32) + ba_ref[...]        # (BB, H)
    uk = jnp.dot(keys.reshape(BB * S, H), uaT_ref[...],
                 preferred_element_type=jnp.float32) + bu_ref[...]                          # (BB*S, H)

    # tanh(Wa(q) + Ua(k)) in f32 on the EUP/VPU.
    t = jnp.tanh(wq.reshape(BB, 1, H) + uk.reshape(BB, S, H))                               # (BB, S, H)

    # Scores lane-dense as (BB, 1, S): batched MXU matmul contracting over H.
    va_b = jnp.broadcast_to(va_ref[...].reshape(1, 1, H), (BB, 1, H))
    sc = jnp.einsum('bqh,bsh->bqs', va_b, t,
                    preferred_element_type=jnp.float32) + bv_ref[...].reshape(1, 1, 1)      # (BB, 1, S)

    # Numerically stable softmax over the last (lane) axis.
    m = jnp.max(sc, axis=-1, keepdims=True)
    e = jnp.exp(sc - m)
    denom = jnp.sum(e, axis=-1, keepdims=True)                                              # (BB, 1, 1)
    inv = pl.reciprocal(denom, approx=True)      # EUP slot (otherwise idle)
    inv = inv * (2.0 - denom * inv)              # one Newton step -> full f32 accuracy
    w = e * inv                                                                              # (BB, 1, S)

    # Context = weights @ keys on the MXU (batched), f32 accumulation.
    ctx = jnp.einsum('bqs,bsh->bqh', w.astype(keys.dtype), keys,
                     preferred_element_type=jnp.float32)                                    # (BB, 1, H)

    ctx_ref[...] = ctx.astype(ctx_ref.dtype)
    w_ref[...] = w.astype(w_ref.dtype)


def bahdanau_attention(query, keys, Wa_w, Wa_b, Ua_w, Ua_b, Va_w, Va_b,
                       *, vmem_budget_bytes=8 << 20):
    """query: (B,1,H), keys: (B,S,H); returns (context (B,1,H), weights (B,1,S))."""
    B, _, H = query.shape
    _, S, _ = keys.shape

    # bf16 operands for the MXU matmuls (halves keys HBM traffic); biases and
    # the Va row stay f32, and all elementwise math in-kernel is f32.
    q_bf = query.astype(jnp.bfloat16)
    k_bf = keys.astype(jnp.bfloat16)
    WaT = jnp.asarray(Wa_w, jnp.float32).T.astype(jnp.bfloat16)   # (H, H)
    UaT = jnp.asarray(Ua_w, jnp.float32).T.astype(jnp.bfloat16)   # (H, H)
    ba = jnp.asarray(Wa_b, jnp.float32).reshape(1, H)
    bu = jnp.asarray(Ua_b, jnp.float32).reshape(1, H)
    va = jnp.asarray(Va_w, jnp.float32).reshape(1, H)
    bv = jnp.asarray(Va_b, jnp.float32).reshape(1, 1)

    # Pick the batch block BB so the double-buffered bf16 keys tile stays well
    # under a conservative VMEM budget (sized for v7x's 64 MiB VMEM / 32 MiB
    # scoped default; v5e/v6e have more headroom).  For realistic B this also
    # naturally leaves >=2 grid steps so both v7x TensorCores get work.
    keys_tile_bytes = 2 * S * H * 2          # double-buffered, bf16
    cap = max(1, vmem_budget_bytes // keys_tile_bytes)
    BB = 1
    for d in range(1, B + 1):                # largest divisor of B that fits
        if B % d == 0 and d <= cap:
            BB = d
    nb = B // BB

    # Note: the weight/bias blocks use a constant index_map so Pallas skips
    # their re-DMA across grid steps; their double-buffer VMEM cost is
    # negligible at this H (pl.Buffered(1) could reclaim it for very large H).
    ctx, w = pl.pallas_call(
        bahdanau_kernel,
        out_shape=(jax.ShapeDtypeStruct((B, 1, H), jnp.float32),
                   jax.ShapeDtypeStruct((B, 1, S), jnp.float32)),
        grid_spec=pltpu.PrefetchScalarGridSpec(
            num_scalar_prefetch=0,
            grid=(nb,),
            in_specs=[
                pl.BlockSpec((BB, 1, H), lambda b: (b, 0, 0)),   # query
                pl.BlockSpec((BB, S, H), lambda b: (b, 0, 0)),   # keys
                pl.BlockSpec((H, H), lambda b: (0, 0)),          # WaT
                pl.BlockSpec((1, H), lambda b: (0, 0)),          # ba
                pl.BlockSpec((H, H), lambda b: (0, 0)),          # UaT
                pl.BlockSpec((1, H), lambda b: (0, 0)),          # bu
                pl.BlockSpec((1, H), lambda b: (0, 0)),          # va
                pl.BlockSpec((1, 1), lambda b: (0, 0)),          # bv
            ],
            out_specs=[
                pl.BlockSpec((BB, 1, H), lambda b: (b, 0, 0)),   # context
                pl.BlockSpec((BB, 1, S), lambda b: (b, 0, 0)),   # weights (lane-dense)
            ],
        ),
        compiler_params=pltpu.CompilerParams(dimension_semantics=("parallel",)),
    )(q_bf, k_bf, WaT, ba, UaT, bu, va, bv)

    return ctx, w


def bahdanau_reference(query, keys, Wa_w, Wa_b, Ua_w, Ua_b, Va_w, Va_b):
    wq = query @ Wa_w.T + Wa_b                      # (B, 1, H)
    uk = keys @ Ua_w.T + Ua_b                       # (B, S, H)
    scores = jnp.tanh(wq + uk) @ Va_w.T + Va_b      # (B, S, 1)
    scores = jnp.transpose(scores, (0, 2, 1))       # (B, 1, S)
    weights = jax.nn.softmax(scores, axis=-1)
    context = weights @ keys                        # (B, 1, H)
    return context, weights


if __name__ == "__main__":
    B, S, H = 2, 8, 32
    key = jax.random.PRNGKey(0)
    kq, kk, k1, k2, k3, k4, k5, k6 = jax.random.split(key, 8)

    query = jax.random.normal(kq, (B, 1, H), dtype=jnp.float32)
    keys = jax.random.normal(kk, (B, S, H), dtype=jnp.float32)

    # Deterministic synthetic parameters (shapes follow nn.Linear in __init__).
    Wa_w = 0.1 * jax.random.normal(k1, (H, H), dtype=jnp.float32)   # Linear(H, H).weight
    Wa_b = 0.1 * jax.random.normal(k2, (H,), dtype=jnp.float32)
    Ua_w = 0.1 * jax.random.normal(k3, (H, H), dtype=jnp.float32)   # Linear(H, H).weight
    Ua_b = 0.1 * jax.random.normal(k4, (H,), dtype=jnp.float32)
    Va_w = 0.1 * jax.random.normal(k5, (1, H), dtype=jnp.float32)   # Linear(H, 1).weight
    Va_b = 0.1 * jax.random.normal(k6, (1,), dtype=jnp.float32)

    ctx, weights = bahdanau_attention(query, keys, Wa_w, Wa_b, Ua_w, Ua_b, Va_w, Va_b)
    ctx = jax.block_until_ready(ctx)
    weights = jax.block_until_ready(weights)

    ctx_ref, w_ref = bahdanau_reference(query, keys, Wa_w, Wa_b, Ua_w, Ua_b, Va_w, Va_b)
    assert ctx.shape == (B, 1, H) and weights.shape == (B, 1, S)
    # bf16 MXU operands (f32 accumulation) => compare at bf16-level tolerance.
    assert jnp.allclose(ctx, ctx_ref, atol=2e-2, rtol=2e-2)
    assert jnp.allclose(weights, w_ref, atol=2e-2, rtol=2e-2)
    assert jnp.allclose(jnp.sum(weights, axis=-1), 1.0, atol=1e-3)

    print("KERNEL_OK")
</pallas_src>

<mosaic_0001>
module attributes {stable_mosaic.version = 11 : i64} {
  func.func @bahdanau_kernel(%arg0: i32, %arg1: memref<2x1x32xbf16, #tpu.memory_space<vmem>>, %arg2: memref<2x8x32xbf16, #tpu.memory_space<vmem>>, %arg3: memref<32x32xbf16, #tpu.memory_space<vmem>>, %arg4: memref<1x32xf32, #tpu.memory_space<vmem>>, %arg5: memref<32x32xbf16, #tpu.memory_space<vmem>>, %arg6: memref<1x32xf32, #tpu.memory_space<vmem>>, %arg7: memref<1x32xf32, #tpu.memory_space<vmem>>, %arg8: memref<1x1xf32, #tpu.memory_space<vmem>>, %arg9: memref<2x1x32xf32, #tpu.memory_space<vmem>>, %arg10: memref<2x1x8xf32, #tpu.memory_space<vmem>>) attributes {dimension_semantics = [#tpu.dimension_semantics<parallel>], iteration_bounds = array<i64: 1>, scalar_prefetch = 0 : i64, scratch_operands = 0 : i64, tpu.core_type = #tpu.core_type<tc>, window_params = [{transform_indices = @transform_0, window_bounds = array<i64: 2, 1, 32>}, {transform_indices = @transform_1, window_bounds = array<i64: 2, 8, 32>}, {pipeline_mode = #tpu.pipeline_mode<synchronous>, transform_indices = @transform_2, window_bounds = array<i64: 32, 32>}, {pipeline_mode = #tpu.pipeline_mode<synchronous>, transform_indices = @transform_3, window_bounds = array<i64: 1, 32>}, {pipeline_mode = #tpu.pipeline_mode<synchronous>, transform_indices = @transform_4, window_bounds = array<i64: 32, 32>}, {pipeline_mode = #tpu.pipeline_mode<synchronous>, transform_indices = @transform_5, window_bounds = array<i64: 1, 32>}, {pipeline_mode = #tpu.pipeline_mode<synchronous>, transform_indices = @transform_6, window_bounds = array<i64: 1, 32>}, {pipeline_mode = #tpu.pipeline_mode<synchronous>, transform_indices = @transform_7, window_bounds = array<i64: 1, 1>}, {transform_indices = @transform_8, window_bounds = array<i64: 2, 1, 32>}, {transform_indices = @transform_9, window_bounds = array<i64: 2, 1, 8>}]} {
    %c0 = arith.constant 0 : index
    %c0_0 = arith.constant 0 : index
    %c0_1 = arith.constant 0 : index
    %0 = vector.load %arg2[%c0, %c0_0, %c0_1] : memref<2x8x32xbf16, #tpu.memory_space<vmem>>, vector<2x8x32xbf16>
    %c0_2 = arith.constant 0 : index
    %c0_3 = arith.constant 0 : index
    %c0_4 = arith.constant 0 : index
    %1 = vector.load %arg1[%c0_2, %c0_3, %c0_4] : memref<2x1x32xbf16, #tpu.memory_space<vmem>>, vector<2x1x32xbf16>
    %2 = vector.shape_cast %1 : vector<2x1x32xbf16> to vector<2x32xbf16>
    %c0_5 = arith.constant 0 : index
    %c0_6 = arith.constant 0 : index
    %3 = vector.load %arg3[%c0_5, %c0_6] : memref<32x32xbf16, #tpu.memory_space<vmem>>, vector<32x32xbf16>
    %cst = arith.constant dense<0.000000e+00> : vector<2x32xf32>
    %4 = tpu.matmul %2, %3, %cst {dimension_numbers = #tpu.dot_dimension_numbers<[1], [0], [0], [1], [0, 0, 1, 1], [], []>} : vector<2x32xbf16>, vector<32x32xbf16>, vector<2x32xf32> -> vector<2x32xf32>
    %c0_7 = arith.constant 0 : index
    %c0_8 = arith.constant 0 : index
    %5 = vector.load %arg4[%c0_7, %c0_8] : memref<1x32xf32, #tpu.memory_space<vmem>>, vector<1x32xf32>
    %6 = vector.broadcast %5 : vector<1x32xf32> to vector<2x32xf32>
    %7 = arith.addf %4, %6 : vector<2x32xf32>
    %8 = vector.shape_cast %0 : vector<2x8x32xbf16> to vector<16x32xbf16>
    %c0_9 = arith.constant 0 : index
    %c0_10 = arith.constant 0 : index
    %9 = vector.load %arg5[%c0_9, %c0_10] : memref<32x32xbf16, #tpu.memory_space<vmem>>, vector<32x32xbf16>
    %cst_11 = arith.constant dense<0.000000e+00> : vector<16x32xf32>
    %10 = tpu.matmul %8, %9, %cst_11 {dimension_numbers = #tpu.dot_dimension_numbers<[1], [0], [0], [1], [0, 0, 1, 1], [], []>} : vector<16x32xbf16>, vector<32x32xbf16>, vector<16x32xf32> -> vector<16x32xf32>
    %c0_12 = arith.constant 0 : index
    %c0_13 = arith.constant 0 : index
    %11 = vector.load %arg6[%c0_12, %c0_13] : memref<1x32xf32, #tpu.memory_space<vmem>>, vector<1x32xf32>
    %12 = vector.broadcast %11 : vector<1x32xf32> to vector<16x32xf32>
    %13 = arith.addf %10, %12 : vector<16x32xf32>
    %14 = vector.shape_cast %7 : vector<2x32xf32> to vector<2x1x32xf32>
    %15 = vector.shape_cast %13 : vector<16x32xf32> to vector<2x8x32xf32>
    %16 = vector.broadcast %14 : vector<2x1x32xf32> to vector<2x8x32xf32>
    %17 = arith.addf %16, %15 : vector<2x8x32xf32>
    %18 = math.tanh %17 : vector<2x8x32xf32>
    %c0_14 = arith.constant 0 : index
    %c0_15 = arith.constant 0 : index
    %19 = vector.load %arg7[%c0_14, %c0_15] : memref<1x32xf32, #tpu.memory_space<vmem>>, vector<1x32xf32>
    %20 = vector.shape_cast %19 : vector<1x32xf32> to vector<1x1x32xf32>
    %21 = vector.shape_cast %20 : vector<1x1x32xf32> to vector<1x1x32xf32>
    %22 = vector.broadcast %21 : vector<1x1x32xf32> to vector<2x1x32xf32>
    "tpu.trace_start"() <{level = 10 : i32, message = "bqh,bsh->bqs"}> : () -> ()
    %cst_16 = arith.constant dense<0.000000e+00> : vector<2x1x8xf32>
    %23 = tpu.matmul %22, %18, %cst_16 {dimension_numbers = #tpu.dot_dimension_numbers<[2], [2], [1], [1], [0, 0, 0, 1, 1, 1], [0], [0]>} : vector<2x1x32xf32>, vector<2x8x32xf32>, vector<2x1x8xf32> -> vector<2x1x8xf32>
    "tpu.trace_stop"() : () -> ()
    %c0_17 = arith.constant 0 : index
    %c0_18 = arith.constant 0 : index
    %24 = vector.load %arg8[%c0_17, %c0_18] : memref<1x1xf32, #tpu.memory_space<vmem>>, vector<1x1xf32>
    %25 = vector.shape_cast %24 : vector<1x1xf32> to vector<1x1x1xf32>
    %26 = vector.broadcast %25 : vector<1x1x1xf32> to vector<2x1x8xf32>
    %27 = arith.addf %23, %26 : vector<2x1x8xf32>
    %cst_19 = arith.constant dense<0xFF800000> : vector<2x1xf32>
    %28 = vector.multi_reduction <maximumf>, %27, %cst_19 [2] : vector<2x1x8xf32> to vector<2x1xf32>
    %29 = vector.shape_cast %28 : vector<2x1xf32> to vector<2x1x1xf32>
    %30 = vector.broadcast %29 : vector<2x1x1xf32> to vector<2x1x8xf32>
    %31 = arith.subf %27, %30 : vector<2x1x8xf32>
    %32 = math.exp %31 : vector<2x1x8xf32>
    %cst_20 = arith.constant dense<0.000000e+00> : vector<2x1xf32>
    %33 = vector.multi_reduction <add>, %32, %cst_20 [2] : vector<2x1x8xf32> to vector<2x1xf32>
    %34 = vector.shape_cast %33 : vector<2x1xf32> to vector<2x1x1xf32>
    %35 = tpu.reciprocal %34 {approx = true} : vector<2x1x1xf32> -> vector<2x1x1xf32>
    %36 = arith.mulf %34, %35 : vector<2x1x1xf32>
    %cst_21 = arith.constant 2.000000e+00 : f32
    %37 = vector.broadcast %cst_21 : f32 to vector<2x1x1xf32>
    %38 = arith.subf %37, %36 : vector<2x1x1xf32>
    %39 = arith.mulf %35, %38 : vector<2x1x1xf32>
    %40 = vector.broadcast %39 : vector<2x1x1xf32> to vector<2x1x8xf32>
    %41 = arith.mulf %32, %40 : vector<2x1x8xf32>
    %42 = arith.truncf %41 : vector<2x1x8xf32> to vector<2x1x8xbf16>
    "tpu.trace_start"() <{level = 10 : i32, message = "bqs,bsh->bqh"}> : () -> ()
    %cst_22 = arith.constant dense<0.000000e+00> : vector<2x1x32xf32>
    %43 = tpu.matmul %42, %0, %cst_22 {dimension_numbers = #tpu.dot_dimension_numbers<[2], [1], [1], [2], [0, 0, 0, 1, 1, 2], [0], [0]>} : vector<2x1x8xbf16>, vector<2x8x32xbf16>, vector<2x1x32xf32> -> vector<2x1x32xf32>
    "tpu.trace_stop"() : () -> ()
    %c0_23 = arith.constant 0 : index
    %c0_24 = arith.constant 0 : index
    %c0_25 = arith.constant 0 : index
    %44 = vector.load %arg9[%c0_23, %c0_24, %c0_25] : memref<2x1x32xf32, #tpu.memory_space<vmem>>, vector<2x1x32xf32>
    tpu.vector_store %arg9[%c0_23, %c0_24, %c0_25], %43 {strides = array<i32>} : memref<2x1x32xf32, #tpu.memory_space<vmem>>, vector<2x1x32xf32>,
    %c0_26 = arith.constant 0 : index
    %c0_27 = arith.constant 0 : index
    %c0_28 = arith.constant 0 : index
    %45 = vector.load %arg10[%c0_26, %c0_27, %c0_28] : memref<2x1x8xf32, #tpu.memory_space<vmem>>, vector<2x1x8xf32>
    tpu.vector_store %arg10[%c0_26, %c0_27, %c0_28], %41 {strides = array<i32>} : memref<2x1x8xf32, #tpu.memory_space<vmem>>, vector<2x1x8xf32>,
    return
  }
  func.func @transform_0(%arg0: i32) -> (i32, i32, i32) {
    %c0_i32 = arith.constant 0 : i32
    %c0_i32_0 = arith.constant 0 : i32
    %c0_i32_1 = arith.constant 0 : i32
    return %arg0, %c0_i32, %c0_i32_0 : i32, i32, i32
  }
  func.func @transform_1(%arg0: i32) -> (i32, i32, i32) {
    %c0_i32 = arith.constant 0 : i32
    %c0_i32_0 = arith.constant 0 : i32
    %c0_i32_1 = arith.constant 0 : i32
    return %arg0, %c0_i32, %c0_i32_0 : i32, i32, i32
  }
  func.func @transform_2(%arg0: i32) -> (i32, i32) {
    %c0_i32 = arith.constant 0 : i32
    %c0_i32_0 = arith.constant 0 : i32
    %c0_i32_1 = arith.constant 0 : i32
    return %c0_i32, %c0_i32_0 : i32, i32
  }
  func.func @transform_3(%arg0: i32) -> (i32, i32) {
    %c0_i32 = arith.constant 0 : i32
    %c0_i32_0 = arith.constant 0 : i32
    %c0_i32_1 = arith.constant 0 : i32
    return %c0_i32, %c0_i32_0 : i32, i32
  }
  func.func @transform_4(%arg0: i32) -> (i32, i32) {
    %c0_i32 = arith.constant 0 : i32
    %c0_i32_0 = arith.constant 0 : i32
    %c0_i32_1 = arith.constant 0 : i32
    return %c0_i32, %c0_i32_0 : i32, i32
  }
  func.func @transform_5(%arg0: i32) -> (i32, i32) {
    %c0_i32 = arith.constant 0 : i32
    %c0_i32_0 = arith.constant 0 : i32
    %c0_i32_1 = arith.constant 0 : i32
    return %c0_i32, %c0_i32_0 : i32, i32
  }
  func.func @transform_6(%arg0: i32) -> (i32, i32) {
    %c0_i32 = arith.constant 0 : i32
    %c0_i32_0 = arith.constant 0 : i32
    %c0_i32_1 = arith.constant 0 : i32
    return %c0_i32, %c0_i32_0 : i32, i32
  }
  func.func @transform_7(%arg0: i32) -> (i32, i32) {
    %c0_i32 = arith.constant 0 : i32
    %c0_i32_0 = arith.constant 0 : i32
    %c0_i32_1 = arith.constant 0 : i32
    return %c0_i32, %c0_i32_0 : i32, i32
  }
  func.func @transform_8(%arg0: i32) -> (i32, i32, i32) {
    %c0_i32 = arith.constant 0 : i32
    %c0_i32_0 = arith.constant 0 : i32
    %c0_i32_1 = arith.constant 0 : i32
    return %arg0, %c0_i32, %c0_i32_0 : i32, i32, i32
  }
  func.func @transform_9(%arg0: i32) -> (i32, i32, i32) {
    %c0_i32 = arith.constant 0 : i32
    %c0_i32_0 = arith.constant 0 : i32
    %c0_i32_1 = arith.constant 0 : i32
    return %arg0, %c0_i32, %c0_i32_0 : i32, i32, i32
  }
}

</mosaic_0001>

<bundles_post_ra>
// kernel: tpu_custom_call.1
= control target key start
LH: loop header
LB: loop body
LE: loop exit
PB: predicated region body
PF: predicated region fallthrough
CT: control target
= control target key end

     0   :  { %s652_s0 = inlined_call_operand.vmem [shape: bf16[2,1,32], index: 0, kind: input, shape index: {}]   ;;  %s653_s1 = inlined_call_operand.hbm [shape: bf16[2,8,32], index: 1, kind: input, shape index: {}]   ;;  %s654_s2 = inlined_call_operand.hbm [shape: bf16[32,32], index: 2, kind: input, shape index: {}]   ;;  %s655_s3 = inlined_call_operand.vmem [shape: f32[1,32], index: 3, kind: input, shape index: {}]   ;;  %s656_s4 = inlined_call_operand.hbm [shape: bf16[32,32], index: 4, kind: input, shape index: {}]   ;;  %s657_s5 = inlined_call_operand.vmem [shape: f32[1,32], index: 5, kind: input, shape index: {}]   ;;  %s658_s6 = inlined_call_operand.vmem [shape: f32[1,32], index: 6, kind: input, shape index: {}]   ;;  %s659_s7 = inlined_call_operand.<no memory space> [shape: f32[1,1], index: 7, kind: input, shape index: {}]   ;;  %s660_s8 = inlined_call_operand.hbm [shape: f32[2,1,32], index: 8, kind: output, shape index: {0}]   ;;  %s661_s9 = inlined_call_operand.hbm [shape: f32[2,1,8], index: 9, kind: output, shape index: {1}]  }
   0x1   :  { %v15_v0 = vstv %s659_s7 }
   0x2   :  { %16 = vst [vmem:[#allocation2] sm:$0x1] %v15_v0 }
   0x3   :  { %17 = vsyncpa [#allocation4], 0 }
   0x4   :  { %18 = vsyncpa [#allocation7], 0 }
   0x5   :  { %19 = vsyncpa [#allocation5], 0 }
   0x6   :  { %20 = vsyncpa [#allocation11], 0  ;;  %s40_s13 = sshll.u32 %s654_s2, 4  ;;  %s547_s14 = smov [#allocation6]   ;;  %s41_s13 = int_to_ptr.hbm [resolvable:$true] %s40_s13 }
   0x7   :  { %s42_s15 = sshll.u32 %s547_s14, 4  ;;  %s27_s18 = sshll.u32 %s653_s1, 4  ;;  %s43_s15 = int_to_ptr.vmem [resolvable:$true] %s42_s15  ;;  %s28_s18 = int_to_ptr.hbm [resolvable:$true] %s27_s18 }
   0x8   :  { %s548_s19 = smov 64   ;;  %s549_s20 = smov 4  }
   0x9   :  { %48 = dma.hbm_to_vmem [thread:$0]  %s41_s13, 256, %s43_s15, [#allocation7], %s548_s19, %s548_s19, %s549_s20  }
   0xa   :  { %s550_s7 = smov [#allocation3]   ;;  %s55_s24 = sshll.u32 %s656_s4, 4  ;;  %s56_s24 = int_to_ptr.hbm [resolvable:$true] %s55_s24 }
   0xb   :  { %s29_s21 = sshll.u32 %s550_s7, 4  ;;  %s551_s2 = smov [#allocation8]   ;;  %s30_s21 = int_to_ptr.vmem [resolvable:$true] %s29_s21 }
   0xc   :  { %35 = dma.hbm_to_vmem [thread:$0]  %s28_s18, 128, %s30_s21, [#allocation4], %s548_s19, %s548_s19, %s549_s20  }
   0xd   :  { %s57_s25 = sshll.u32 %s551_s2, 4  ;;  %s58_s25 = int_to_ptr.vmem [resolvable:$true] %s57_s25 }
   0xe   :  { %63 = dma.hbm_to_vmem [thread:$0]  %s56_s24, 256, %s58_s25, [#allocation7], %s548_s19, %s548_s19, %s549_s20  }
   0xf   :  { %539 = dma.done.wait [#allocation4], 128  }
  0x10   :  { %540 = vsyncadd [#allocation4], 4294967168 }
  0x11   :  { %541 = dma.done.wait [#allocation7], 512  }
  0x12   :  { %542 = vsyncadd [#allocation7], 4294966784  ;;  %v393_v1 = vld [vmem:[#allocation8 + $0x8] sm:$0xff]  ;;  %v391_v2 = vld [vmem:[#allocation6 + $0x8] sm:$0xff]  ;;  %vm121_vm0 = vcmask 261120   ;;  %vm106_vm1 = vcmask 1041409  }
  0x13   :  { %v85_v3 = vld [vmem:[%s652_s0] sm:$0x1]  ;;  %172 = vmatpush.bf16.msra.mxu1 %v393_v1  ;;  %v392_v4 = vld [vmem:[#allocation8] sm:$0xff]  ;;  %131 = vmatpush.bf16.msra.mxu0 %v391_v2  ;;  %v390_v5 = vld [vmem:[#allocation6] sm:$0xff]  ;;  %v552_v16 = vmov 0   ;;  %vm247_vm2 = vcmask 57344  }
  0x14   :  { %96 = vst [vmem:[#allocation1] ss:$9 sm:$0xff] %v85_v3  ;;  %v389_v6 = vld [vmem:[#allocation3] sm:$0xff]  ;;  %v86_v7 = vld [vmem:[%s652_s0 + $0x1] sm:$0x1]  ;;  %404 = vset.pattern.permute.xlu0 %v552_v16  ;;  %vm282_vm3 = vcmask 1043456  }
  0x15   :  { %v191_v15 = vld [vmem:[#allocation2] sm:$0x1]  ;;  %v406_v18 = vld [vmem:[%s655_s3] ss:$0 sm:$0xff]  ;;  %v83_v52 = vld [vmem:[#allocation3] sm:$0xf] }
  0x16   :  { %194 = vperm.xlu0 %404, %v191_v15   ;;  %v405_v19 = vld [vmem:[%s657_s5] ss:$0 sm:$0xff]  ;;  %v284_v53 = vsel %vm282_vm3, %v83_v52, 0  ;;  %v84_v54 = vld [vmem:[#allocation3 + $0x4] sm:$0xf]  ;;  %vm278_vm4 = vcmask 64512  }
  0x17   :  { %173 = vmatpush.bf16.msra.mxu1 %v392_v4  ;;  %132 = vmatpush.bf16.msra.mxu0 %v390_v5  ;;  %v190_v32 = vld [vmem:[%s658_s6] sm:$0x1]  ;;  %v303_v55 = vsel %vm282_vm3, %v84_v54, 0  ;;  %s553_s5 = smov [#allocation10]   ;;  %s342_s13 = sshll.u32 %s661_s9, 4  ;;  %vm318_vm5 = vcmask 253952   ;;  %s343_s13 = int_to_ptr.hbm [resolvable:$true] %s342_s13 }
  0x18   :  { %s340_s6 = sshll.u32 %s553_s5, 4  ;;  %s554_s14 = smov 16   ;;  %s341_s6 = int_to_ptr.vmem [resolvable:$true] %s340_s6 }
  0x19   :  { %s555_s15 = smov 1   ;;  %s556_s16 = smov [#allocation9]  }
  0x1a   :  { %382 = vmatmul.msk.bf16.vlgmr.msra.gmra.mxu1 %vm121_vm0, %v389_v6  ;;  %s327_s17 = sshll.u32 %s556_s16, 4  ;;  %s329_s20 = sshll.u32 %s660_s8, 4  ;;  %s328_s17 = int_to_ptr.vmem [resolvable:$true] %s327_s17  ;;  %s330_s20 = int_to_ptr.hbm [resolvable:$true] %s329_s20 }
  0x1b   :  { %v97_v8 = vld [vmem:[#allocation1] sm:$0xf] }
  0x1c   :  { %100 = vst [vmem:[#allocation1] ss:$9 sm:$0xff] %v86_v7  ;;  %v103_v10 = vunpack.c.l.b16 %v97_v8 }
  0x23   :  { %v101_v9 = vld [vmem:[#allocation1] sm:$0xf] }
  0x24   :  { %v104_v11 = vunpack.c.l.b16 %v101_v9 }
  0x26   :  { %v105_v12 = vrot.slane %v104_v11, 7 }
  0x28   :  { %v107_v13 = vsel %vm106_vm1, %v105_v12, %v103_v10 }
  0x29   :  { %v108_v14 = vpack.c.b16 %v107_v13, %v107_v13 }
  0x2b   :  { %369 = vmatmul.msk.bf16.vlgmr.msra.gmra.mxu0 %vm121_vm0, %v108_v14 }
  0x88   :  { %v195_v34 = vpop.permute.xlu0 %194 }
  0x89   :  { %v197_v35 = vperm.slane %v195_v34, 0 }
  0x97   :  { %v175_v17 = vpop.f32.mrf.mxu1 }
  0x98   :  { %v176_v23 = vadd.f32 %v405_v19, %v175_v17 }
  0x9f   :  { %v177_v22 = vpop.f32.mrf.mxu1 }
  0xa0   :  { %v178_v26 = vadd.f32 %v405_v19, %v177_v22 }
  0xa8   :  { %v134_v20 = vpop.f32.mrf.mxu0 }
  0xa9   :  { %v135_v21 = vadd.f32 %v406_v18, %v134_v20 }
  0xab   :  { %v181_v24 = vrot.slane %v135_v21, 1  ;;  %v182_v25 = vperm.slane %v135_v21, 0 }
  0xad   :  { %v183_v27 = vperm.slane %v181_v24, 0  ;;  %v186_v28 = vadd.f32 %v182_v25, %v176_v23 }
  0xaf   :  { %v187_v29 = vadd.f32 %v183_v27, %v178_v26  ;;  %407 = vtanh.f32 %v186_v28 }
  0xb0   :  { %v136_v30 = vpop.f32.mrf.mxu0 }
  0xb1   :  { %409 = vtanh.f32 %v187_v29 }
  0xb5   :  { %v408_v31 = vpop.eup %407 }
  0xb6   :  { %383 = vmatpush.xpose.msk.msra.mxu2 %vm121_vm0, %v408_v31 }
  0xb7   :  { %v410_v33 = vpop.eup %409 }
  0xb8   :  { %385 = vmatpush.xpose.msk.msra.mxu3 %vm121_vm0, %v410_v33 }
  0xb9   :  { %384 = vmatmul.msk.f32.vlgmr.msra.gmra.mxu2 %vm121_vm0, %v190_v32 }
  0xba   :  { %293 = vmatpush.bf16.msrb.mxu2 %v284_v53 }
  0xbb   :  { %386 = vmatmul.msk.f32.vlgmr.msra.gmra.mxu3 %vm121_vm0, %v190_v32 }
  0xbc   :  { %312 = vmatpush.bf16.msrb.mxu3 %v303_v55 }
 0x13c   :  { %v221_v36 = vpop.f32.mrf.mxu2 }
 0x13d   :  { %v222_v37 = vadd.f32 %v221_v36, %v197_v35 }
 0x13e   :  { %v244_v38 = vpop.f32.mrf.mxu3 }
 0x13f   :  { %v245_v39 = vadd.f32 %v244_v38, %v197_v35  ;;  %v248_v40 = vsel %vm247_vm2, %v222_v37, -inf }
 0x140   :  { %249 = vmax.xlane.f32.xlu0 %v248_v40 }
 0x141   :  { %v251_v41 = vsel %vm247_vm2, %v245_v39, -inf }
 0x142   :  { %252 = vmax.xlane.f32.xlu1 %v251_v41 }
 0x1b3   :  { %v250_v42 = vpop.xlane.xlu0 %249 }
 0x1b4   :  { %v254_v43 = vsub.f32 %v222_v37, %v250_v42 }
 0x1b5   :  { %v253_v44 = vpop.xlane.xlu1 %252 }
 0x1b6   :  { %v256_v45 = vmul.f32 1.442695, %v254_v43  ;;  %v255_v46 = vsub.f32 %v245_v39, %v253_v44 }
 0x1b8   :  { %411 = vpow2.f32 %v256_v45  ;;  %v258_v47 = vmul.f32 1.442695, %v255_v46 }
 0x1ba   :  { %413 = vpow2.f32 %v258_v47 }
 0x1be   :  { %v412_v48 = vpop.eup %411 }
 0x1bf   :  { %v260_v49 = vsel %vm247_vm2, %v412_v48, 0.0 }
 0x1c0   :  { %v414_v50 = vpop.eup %413  ;;  %261 = vadd.xlane.f32.xlu1 %v260_v49 }
 0x1c1   :  { %v263_v51 = vsel %vm247_vm2, %v414_v50, 0.0 }
 0x1c2   :  { %264 = vadd.xlane.f32.xlu2 %v263_v51 }
 0x233   :  { %v262_v56 = vpop.xlane.xlu1 %261 }
 0x234   :  { %415 = vrcp.f32 %v262_v56 }
 0x235   :  { %v265_v57 = vpop.xlane.xlu2 %264 }
 0x236   :  { %417 = vrcp.f32 %v265_v57 }
 0x23a   :  { %v416_v58 = vpop.eup %415 }
 0x23b   :  { %v268_v59 = vmul.f32 %v416_v58, %v262_v56 }
 0x23c   :  { %v418_v60 = vpop.eup %417 }
 0x23d   :  { %v270_v61 = vsub.f32 2.0, %v268_v59  ;;  %v269_v62 = vmul.f32 %v418_v60, %v265_v57 }
 0x23f   :  { %v272_v63 = vmul.f32 %v416_v58, %v270_v61  ;;  %v271_v0 = vsub.f32 2.0, %v269_v62 }
 0x241   :  { %v274_v1 = vmul.f32 %v412_v48, %v272_v63  ;;  %v273_v2 = vmul.f32 %v418_v60, %v271_v0 }
 0x243   :  { %v276_v3 = vpack.c.bf16 %v274_v1, %v274_v1  ;;  %321 = vst.msk [vmem:[#allocation10] sm:$0x1] %vm247_vm2, %v274_v1  ;;  %v275_v4 = vmul.f32 %v414_v50, %v273_v2 }
 0x245   :  { %v277_v5 = vpack.c.bf16 %v275_v4, %v275_v4  ;;  %322 = vst.msk [vmem:[#allocation10 + $0x1] sm:$0x1] %vm247_vm2, %v275_v4  ;;  %387 = vmatmul.msk.bf16.vlgmr.msrb.gmra.mxu2 %vm278_vm4, %v276_v3 }
 0x246   :  { %348 = dma.vmem_to_hbm [thread:$0]  %s341_s6, 32, %s343_s13, [#allocation11], %s554_s14, %s554_s14, %s555_s15  }
 0x247   :  { %388 = vmatmul.msk.bf16.vlgmr.msrb.gmra.mxu3 %vm278_vm4, %v277_v5 }
 0x2c8   :  { %v295_v6 = vpop.f32.mrf.mxu2 }
 0x2c9   :  { %319 = vst.msk [vmem:[#allocation9] sm:$0x1] %vm318_vm5, %v295_v6 }
 0x2ca   :  { %v314_v7 = vpop.f32.mrf.mxu3 }
 0x2cb   :  { %320 = vst.msk [vmem:[#allocation9 + $0x1] sm:$0x1] %vm318_vm5, %v314_v7 }
 0x2cc   :  { %335 = dma.vmem_to_hbm [thread:$0]  %s328_s17, 32, %s330_s20, [#allocation5], %s554_s14, %s554_s14, %s555_s15  }
 0x2d0   :  { %v297_v8 = vpop.f32.mrf.mxu2 }
 0x2d2   :  { %v316_v9 = vpop.f32.mrf.mxu3 }
 0x2d3   :  { %543 = dma.done.wait [#allocation5], 32  }
 0x2d4   :  { %544 = vsyncadd [#allocation5], 4294967264 }
 0x2d5   :  { %545 = dma.done.wait [#allocation11], 32  }
 0x2d6   :  { %546 = vsyncadd [#allocation11], 4294967264 }
 0x2d7   :  { %357 = vsyncpa [#allocation4], 1 }
 0x2d8   :  { %358 = vsyncpa [#allocation7], 1 }
 0x2d9   :  { %359 = vsyncpa [#allocation5], 1 }
 0x2da   :  { %360 = vsyncpa [#allocation11], 1 }

</bundles_post_ra>
